<compile_context>
chip_gen: v6e
topology: v6e:2x2x1
jax: 0.10.0
libtpu: 0.0.40
codegen_flags: <defaults>
</compile_context>

<pallas_src>
import numpy as np
import jax
import jax.numpy as jnp
from jax.experimental import pallas as pl
from jax.experimental.pallas import tpu as pltpu


def _round_up(n, m):
    return ((n + m - 1) // m) * m


# ----------------------------- Pallas kernel --------------------------------

def _tree_predict_kernel(x_ref, sel_ref, thr_ref, w_ref, negsum_ref, leaf_ref,
                         out_ref):
    # x_ref     : (Fp, TB)   feature-major batch tile (batch on lanes)
    # sel_ref   : (Brp, Fp)  one-hot row j selects feature[j]           (f32)
    # thr_ref   : (Brp, 1)   per-branch thresholds (padded rows = +max) (f32)
    # w_ref     : (Lp, Brp)  fused matrix cond_mask - 2*cond            (bf16)
    # negsum_ref: (Lp, 1)    -cond.sum(1) per leaf (padded rows = +1)   (f32)
    # leaf_ref  : (1, Lp)    precomputed class label per leaf           (f32)
    # out_ref   : (1, TB)    predicted label per sample, lane-dense

    # Fused feature gather on the MXU: x_feat[j, b] = x[b, feature[j]]
    x_feat = jnp.dot(sel_ref[...], x_ref[...],
                     preferred_element_type=jnp.float32)           # (Brp, TB)

    # Branch decisions; exact 0/1 values cast to bf16 for the MXU.
    comp = (x_feat > thr_ref[...]).astype(jnp.bfloat16)            # (Brp, TB)

    # Single fused count matmul; f32 accumulation keeps the small integer counts exact.
    score = jnp.dot(w_ref[...], comp,
                    preferred_element_type=jnp.float32)            # (Lp, TB)

    # Leaf l matches sample b iff score[l,b] == -csum[l] (exactly one real leaf matches;
    # padded leaves have W-row == 0 and target +1, so they never match).
    match = (score == negsum_ref[...]).astype(jnp.float32)         # (Lp, TB) one-hot

    # Label select on the MXU; lands lane-dense for the (1, TB) store.
    out_ref[...] = jnp.dot(leaf_ref[...], match,
                           preferred_element_type=jnp.float32)     # (1, TB)


# ------------------------------- wrapper -------------------------------------

def tree_predict_pallas(x, feature, threshold, cond, cond_mask, value, classes,
                        tile_b=4096):
    """Forward pass of TorchDecisionTreeClassifier (n_outputs == 1).

    Tree parameters are static numpy arrays; all tree-side preprocessing
    (one-hot select matrix, fused W matrix, per-leaf class labels, padding)
    happens here at setup time.
    """
    x = jnp.asarray(x, jnp.float32)
    B, F = x.shape

    feature = np.asarray(feature).astype(np.int64)
    threshold = np.asarray(threshold, dtype=np.float32)
    cond = np.asarray(cond, dtype=np.float32)
    cond_mask = np.asarray(cond_mask, dtype=np.float32)
    value = np.asarray(value, dtype=np.float32)
    classes_np = np.asarray(classes)

    L, Br = cond.shape
    n_classes = int(classes_np.shape[0])

    # ---- setup-time precompute (numpy) ----
    Brp = _round_up(max(Br, 1), 8)
    Lp = _round_up(max(L, 1), 8)
    F_pad = _round_up(max(F, 1), 8)

    sel = np.zeros((Brp, F_pad), dtype=np.float32)                # one-hot feature select
    sel[np.arange(Br), feature] = 1.0

    thr = np.full((Brp, 1), np.finfo(np.float32).max, dtype=np.float32)
    thr[:Br, 0] = threshold                                       # padded branches never fire

    # Fused condition matrix: match  <=>  (cond_mask - 2*cond) @ comp == -cond.sum(1)
    w = np.zeros((Lp, Brp), dtype=np.float32)
    w[:L, :Br] = cond_mask - 2.0 * cond                           # values in {-2,-1,0,1}

    neg_csum = np.full((Lp, 1), 1.0, dtype=np.float32)            # padded leaves never match
    neg_csum[:L, 0] = -cond.sum(axis=1)

    # per-leaf class label = classes[argmax(value[l, 0, :n_classes])]  (n_outputs == 1)
    value2d = value.reshape(L, -1)[:, :n_classes]
    leaf_cls = np.argmax(value2d, axis=1)
    leaf_row = np.zeros((1, Lp), dtype=np.float32)
    leaf_row[0, :L] = classes_np[leaf_cls].astype(np.float32)     # exact for |label| < 2^24

    # ---- batch tiling / padding ----
    tile_b = _round_up(max(int(tile_b), 128), 128)                # lane-dense output tiles
    b128 = _round_up(max(B, 1), 128)
    tile_b = min(tile_b, b128)                                    # never tile past the batch
    # Keep >= 2 grid steps when the batch allows (v7x: shard batch tiles over both TCs).
    if b128 >= 512 and tile_b > b128 // 2:
        tile_b = max(256, ((b128 // 2) // 256) * 256)

    def _vmem_estimate(tb):
        f32 = 4
        x_blk = _round_up(F_pad, 8) * tb * f32 * 2                          # 2 buffers
        out_blk = 8 * tb * f32 * 2
        consts = (Brp * _round_up(F_pad, 128) * f32                         # sel
                  + Brp * 128 * f32                                         # thr
                  + _round_up(Lp, 16) * _round_up(Brp, 128) * 2             # W (bf16)
                  + Lp * 128 * f32                                          # -csum
                  + 8 * _round_up(Lp, 128) * f32) * 2                       # leaf labels
        inter = (Brp * tb * f32                                             # x_feat
                 + Brp * tb * 2                                             # comp (bf16)
                 + 2 * Lp * tb * f32)                                       # score + match
        return x_blk + out_blk + consts + inter

    VMEM_BUDGET = 48 * 1024 * 1024          # safe on v7x's 64 MiB physical VMEM
    while tile_b > 128 and _vmem_estimate(tile_b) > VMEM_BUDGET:
        tile_b = max(128, (tile_b // 2 // 128) * 128)

    num_tiles = pl.cdiv(B, tile_b)
    B_pad = num_tiles * tile_b

    # Feature-major, padded input: dense lane-wide DMA rows, no lane padding at small F.
    x_t = jnp.pad(x.T, ((0, F_pad - F), (0, B_pad - B)))

    vmem_limit = int(min(max(_vmem_estimate(tile_b) * 3 // 2, 32 * 1024 * 1024),
                         56 * 1024 * 1024))

    labels = pl.pallas_call(
        _tree_predict_kernel,
        out_shape=jax.ShapeDtypeStruct((1, B_pad), jnp.float32),
        grid_spec=pltpu.PrefetchScalarGridSpec(
            num_scalar_prefetch=0,
            grid=(num_tiles,),
            in_specs=[
                pl.BlockSpec((F_pad, tile_b), lambda i: (0, i)),   # x (feature-major, tiled)
                pl.BlockSpec((Brp, F_pad), lambda i: (0, 0)),      # one-hot feature select
                pl.BlockSpec((Brp, 1), lambda i: (0, 0)),          # thresholds
                pl.BlockSpec((Lp, Brp), lambda i: (0, 0)),         # W = cond_mask - 2*cond
                pl.BlockSpec((Lp, 1), lambda i: (0, 0)),           # -cond.sum(1)
                pl.BlockSpec((1, Lp), lambda i: (0, 0)),           # per-leaf labels (row)
            ],
            out_specs=pl.BlockSpec((1, tile_b), lambda i: (0, i)), # lane-dense output
        ),
        compiler_params=pltpu.CompilerParams(
            dimension_semantics=("parallel",),
            vmem_limit_bytes=vmem_limit),
    )(x_t, jnp.asarray(sel), jnp.asarray(thr),
      jnp.asarray(w, dtype=jnp.bfloat16), jnp.asarray(neg_csum),
      jnp.asarray(leaf_row))

    return labels[0, :B].astype(classes_np.dtype)


# ------------------------ synthetic tree construction -----------------------

class _SynthTree:
    pass


def build_synthetic_tree(n_features, n_classes, depth):
    """Complete binary tree in sklearn-like array format, deterministic."""
    n_internal = 2 ** depth - 1
    n_nodes = 2 ** (depth + 1) - 1
    children_left = np.full(n_nodes, -1, dtype=np.int64)
    children_right = np.full(n_nodes, -1, dtype=np.int64)
    feature = np.full(n_nodes, -2, dtype=np.int64)
    threshold = np.full(n_nodes, -2.0, dtype=np.float64)
    rng = np.random.RandomState(0)
    for i in range(n_internal):
        children_left[i] = 2 * i + 1
        children_right[i] = 2 * i + 2
        feature[i] = i % n_features
        threshold[i] = rng.uniform(-1.0, 1.0)
    value = rng.uniform(0.0, 10.0, size=(n_nodes, 1, n_classes))
    t = _SynthTree()
    t.children_left = children_left
    t.children_right = children_right
    t.feature = feature
    t.threshold = threshold.astype(np.float32)
    t.value = value.astype(np.float32)
    return t


def preprocess_tree(tree):
    """Replicates BaseTree.__init__ preprocessing (numpy, setup-time glue)."""
    n = len(tree.value)
    is_branch = np.zeros(n, dtype=bool)
    node_conditions = np.zeros((n, n), dtype=bool)
    node_conditions_mask = node_conditions.copy()

    def enumerate_tree(node_id, parent_id=None):
        if parent_id is not None:
            node_conditions_mask[node_id] = node_conditions_mask[parent_id]
            node_conditions_mask[node_id][parent_id] = True
        left_id, right_id = tree.children_left[node_id], tree.children_right[node_id]
        if left_id != right_id:
            is_branch[node_id] = True
            node_conditions[left_id] = node_conditions[node_id]
            node_conditions[right_id] = node_conditions[node_id]
            node_conditions[right_id][node_id] = True
            enumerate_tree(left_id, node_id)
            enumerate_tree(right_id, node_id)

    enumerate_tree(0)
    is_leaf = ~is_branch
    feature = tree.feature[is_branch]
    threshold = tree.threshold[is_branch]
    value = tree.value[is_leaf]
    cond = node_conditions[np.ix_(is_leaf, is_branch)]
    cond_mask = node_conditions_mask[np.ix_(is_leaf, is_branch)]
    return feature, threshold, value, cond, cond_mask


# ---------------------------- pure-numpy reference ---------------------------

def reference_predict(x, feature, threshold, cond, cond_mask, value, classes, n_classes):
    comparisons = (x[:, feature] > threshold).astype(np.int32)
    cond_i = cond.astype(np.int32)
    cond_mask_i = cond_mask.astype(np.int32)
    cond_counts = comparisons @ cond_i.T
    no_false_neg = cond_counts == cond_i.sum(1)
    no_false_pos = cond_counts == comparisons @ cond_mask_i.T
    leaf_idx = (no_false_neg & no_false_pos).astype(np.int32).argmax(-1)
    y = value[leaf_idx]                 # [B, 1, C]
    proba = y[:, 0, :n_classes]
    return classes[np.argmax(proba, axis=1)]


# ---------------------------------- main -------------------------------------

if __name__ == "__main__":
    B, F, n_classes, depth = 200, 8, 3, 3          # B not a tile multiple -> tests padding
    tree = build_synthetic_tree(F, n_classes, depth)
    feature_np, threshold_np, value_np, cond_np, cond_mask_np = preprocess_tree(tree)
    classes_np = np.array([11, 22, 33], dtype=np.int32)

    key = jax.random.PRNGKey(0)
    x = jax.random.uniform(key, (B, F), dtype=jnp.float32, minval=-2.0, maxval=2.0)

    ref = reference_predict(np.asarray(x), feature_np, threshold_np, cond_np,
                            cond_mask_np, value_np, classes_np, n_classes)

    # Small explicit tile -> exercises padding + a multi-step grid.
    out_small = tree_predict_pallas(
        x, feature_np, threshold_np, cond_np, cond_mask_np, value_np, classes_np,
        tile_b=128)
    out_small = jax.block_until_ready(out_small)
    assert np.array_equal(np.asarray(out_small), ref), (np.asarray(out_small), ref)

    # Default auto-sized tile path.
    out_default = tree_predict_pallas(
        x, feature_np, threshold_np, cond_np, cond_mask_np, value_np, classes_np)
    out_default = jax.block_until_ready(out_default)
    assert np.array_equal(np.asarray(out_default), ref), (np.asarray(out_default), ref)

    print("KERNEL_OK")
</pallas_src>

<mosaic_0001>
module attributes {stable_mosaic.version = 11 : i64} {
  func.func @_tree_predict_kernel(%arg0: i32, %arg1: memref<8x128xf32, #tpu.memory_space<vmem>>, %arg2: memref<8x8xf32, #tpu.memory_space<vmem>>, %arg3: memref<8x1xf32, #tpu.memory_space<vmem>>, %arg4: memref<8x8xbf16, #tpu.memory_space<vmem>>, %arg5: memref<8x1xf32, #tpu.memory_space<vmem>>, %arg6: memref<1x8xf32, #tpu.memory_space<vmem>>, %arg7: memref<1x128xf32, #tpu.memory_space<vmem>>) attributes {dimension_semantics = [#tpu.dimension_semantics<parallel>], iteration_bounds = array<i64: 2>, scalar_prefetch = 0 : i64, scratch_operands = 0 : i64, tpu.core_type = #tpu.core_type<tc>, window_params = [{transform_indices = @transform_0, window_bounds = array<i64: 8, 128>}, {pipeline_mode = #tpu.pipeline_mode<synchronous>, transform_indices = @transform_1, window_bounds = array<i64: 8, 8>}, {pipeline_mode = #tpu.pipeline_mode<synchronous>, transform_indices = @transform_2, window_bounds = array<i64: 8, 1>}, {pipeline_mode = #tpu.pipeline_mode<synchronous>, transform_indices = @transform_3, window_bounds = array<i64: 8, 8>}, {pipeline_mode = #tpu.pipeline_mode<synchronous>, transform_indices = @transform_4, window_bounds = array<i64: 8, 1>}, {pipeline_mode = #tpu.pipeline_mode<synchronous>, transform_indices = @transform_5, window_bounds = array<i64: 1, 8>}, {transform_indices = @transform_6, window_bounds = array<i64: 1, 128>}]} {
    %c0 = arith.constant 0 : index
    %c0_0 = arith.constant 0 : index
    %0 = vector.load %arg2[%c0, %c0_0] : memref<8x8xf32, #tpu.memory_space<vmem>>, vector<8x8xf32>
    %c0_1 = arith.constant 0 : index
    %c0_2 = arith.constant 0 : index
    %1 = vector.load %arg1[%c0_1, %c0_2] : memref<8x128xf32, #tpu.memory_space<vmem>>, vector<8x128xf32>
    %cst = arith.constant dense<0.000000e+00> : vector<8x128xf32>
    %2 = tpu.matmul %0, %1, %cst {dimension_numbers = #tpu.dot_dimension_numbers<[1], [0], [0], [1], [0, 0, 1, 1], [], []>} : vector<8x8xf32>, vector<8x128xf32>, vector<8x128xf32> -> vector<8x128xf32>
    %c0_3 = arith.constant 0 : index
    %c0_4 = arith.constant 0 : index
    %3 = vector.load %arg3[%c0_3, %c0_4] : memref<8x1xf32, #tpu.memory_space<vmem>>, vector<8x1xf32>
    %4 = vector.broadcast %3 : vector<8x1xf32> to vector<8x128xf32>
    %5 = arith.cmpf ogt, %2, %4 : vector<8x128xf32>
    %6 = arith.extui %5 : vector<8x128xi1> to vector<8x128xi32>
    %7 = arith.sitofp %6 : vector<8x128xi32> to vector<8x128xf32>
    %8 = arith.truncf %7 : vector<8x128xf32> to vector<8x128xbf16>
    %c0_5 = arith.constant 0 : index
    %c0_6 = arith.constant 0 : index
    %9 = vector.load %arg4[%c0_5, %c0_6] : memref<8x8xbf16, #tpu.memory_space<vmem>>, vector<8x8xbf16>
    %cst_7 = arith.constant dense<0.000000e+00> : vector<8x128xf32>
    %10 = tpu.matmul %9, %8, %cst_7 {dimension_numbers = #tpu.dot_dimension_numbers<[1], [0], [0], [1], [0, 0, 1, 1], [], []>} : vector<8x8xbf16>, vector<8x128xbf16>, vector<8x128xf32> -> vector<8x128xf32>
    %c0_8 = arith.constant 0 : index
    %c0_9 = arith.constant 0 : index
    %11 = vector.load %arg5[%c0_8, %c0_9] : memref<8x1xf32, #tpu.memory_space<vmem>>, vector<8x1xf32>
    %12 = vector.broadcast %11 : vector<8x1xf32> to vector<8x128xf32>
    %13 = arith.cmpf oeq, %10, %12 : vector<8x128xf32>
    %14 = arith.extui %13 : vector<8x128xi1> to vector<8x128xi32>
    %15 = arith.sitofp %14 : vector<8x128xi32> to vector<8x128xf32>
    %c0_10 = arith.constant 0 : index
    %c0_11 = arith.constant 0 : index
    %16 = vector.load %arg6[%c0_10, %c0_11] : memref<1x8xf32, #tpu.memory_space<vmem>>, vector<1x8xf32>
    %cst_12 = arith.constant dense<0.000000e+00> : vector<1x128xf32>
    %17 = tpu.matmul %16, %15, %cst_12 {dimension_numbers = #tpu.dot_dimension_numbers<[1], [0], [0], [1], [0, 0, 1, 1], [], []>} : vector<1x8xf32>, vector<8x128xf32>, vector<1x128xf32> -> vector<1x128xf32>
    %c0_13 = arith.constant 0 : index
    %c0_14 = arith.constant 0 : index
    %18 = vector.load %arg7[%c0_13, %c0_14] : memref<1x128xf32, #tpu.memory_space<vmem>>, vector<1x128xf32>
    tpu.vector_store %arg7[%c0_13, %c0_14], %17 {strides = array<i32>} : memref<1x128xf32, #tpu.memory_space<vmem>>, vector<1x128xf32>,
    return
  }
  func.func @transform_0(%arg0: i32) -> (i32, i32) {
    %c0_i32 = arith.constant 0 : i32
    %c0_i32_0 = arith.constant 0 : i32
    return %c0_i32, %arg0 : i32, i32
  }
  func.func @transform_1(%arg0: i32) -> (i32, i32) {
    %c0_i32 = arith.constant 0 : i32
    %c0_i32_0 = arith.constant 0 : i32
    %c0_i32_1 = arith.constant 0 : i32
    return %c0_i32, %c0_i32_0 : i32, i32
  }
  func.func @transform_2(%arg0: i32) -> (i32, i32) {
    %c0_i32 = arith.constant 0 : i32
    %c0_i32_0 = arith.constant 0 : i32
    %c0_i32_1 = arith.constant 0 : i32
    return %c0_i32, %c0_i32_0 : i32, i32
  }
  func.func @transform_3(%arg0: i32) -> (i32, i32) {
    %c0_i32 = arith.constant 0 : i32
    %c0_i32_0 = arith.constant 0 : i32
    %c0_i32_1 = arith.constant 0 : i32
    return %c0_i32, %c0_i32_0 : i32, i32
  }
  func.func @transform_4(%arg0: i32) -> (i32, i32) {
    %c0_i32 = arith.constant 0 : i32
    %c0_i32_0 = arith.constant 0 : i32
    %c0_i32_1 = arith.constant 0 : i32
    return %c0_i32, %c0_i32_0 : i32, i32
  }
  func.func @transform_5(%arg0: i32) -> (i32, i32) {
    %c0_i32 = arith.constant 0 : i32
    %c0_i32_0 = arith.constant 0 : i32
    %c0_i32_1 = arith.constant 0 : i32
    return %c0_i32, %c0_i32_0 : i32, i32
  }
  func.func @transform_6(%arg0: i32) -> (i32, i32) {
    %c0_i32 = arith.constant 0 : i32
    %c0_i32_0 = arith.constant 0 : i32
    return %c0_i32, %arg0 : i32, i32
  }
}

</mosaic_0001>

<bundles_post_ra>
// kernel: tpu_custom_call.1
= control target key start
LH: loop header
LB: loop body
LE: loop exit
PB: predicated region body
PF: predicated region fallthrough
CT: control target
= control target key end

     0   :  { %11 = vsyncpa [#allocation3], 0  ;;  %s919_s0 = inlined_call_operand.vmem [shape: f32[8,256], index: 0, kind: input, shape index: {}]   ;;  %s920_s1 = inlined_call_operand.hbm [shape: f32[8,8], index: 1, kind: input, shape index: {}]   ;;  %s921_s2 = inlined_call_operand.vmem [shape: f32[8,1], index: 2, kind: input, shape index: {}]   ;;  %s922_s3 = inlined_call_operand.vmem [shape: bf16[8,8], index: 3, kind: input, shape index: {}]   ;;  %s923_s4 = inlined_call_operand.vmem [shape: f32[8,1], index: 4, kind: input, shape index: {}]   ;;  %s924_s5 = inlined_call_operand.vmem [shape: f32[1,8], index: 5, kind: input, shape index: {}]   ;;  %s925_s6 = inlined_call_operand.hbm [shape: f32[1,256], index: 6, kind: output, shape index: {}]  }
   0x1   :  { %12 = vsyncpa [#allocation4], 0 }
   0x2   :  { %14 = vsyncpa [#allocation4 + $0x1], 0  ;;  %s784_s21 = smov 0   ;;  %s786_s22 = smov 0  }
   0x3   :  { %s788_s23 = smov 0   ;;  %s790_s24 = smov 0  }
   0x4 LB: > { %s805_s25 = sadd.s32 4294967295, %s741_s24   ;;  %s558_s26 = sadd.s32 4294967294, %s741_s24   ;;  %s741_s24 = sphi %s790_s24, %s933_s24   ;;  %s737_s23 = sphi %s788_s23, %s932_s23   ;;  %s733_s22 = sphi %s786_s22, %s931_s22   ;;  %s729_s21 = sphi %s784_s21, %s930_s21  }
   0x5   : > { %s809_s27 = sadd.s32 1, %s741_s24   ;;  %s158_s28 = sadd.s32 1, %s737_s23 }
   0x6   : > { %s155_s29 = ssub.s32 %s741_s24, %s809_s27  ;;  %p168_p0 = scmp.ne.s32.totalorder %s737_s23, %s733_s22 }
   0x7   : > { %p156_p1 = scmp.eq.s32.totalorder %s155_s29, 0  ;;  %p169_p2 = scmp.eq.s32.totalorder %s805_s25, 1 }
   0x8   : > { %p174_p3 = scmp.ne.s32.totalorder %s733_s22, %s729_s21  ;;  %p175_p4 = scmp.eq.s32.totalorder %s558_s26, 1 }
   0x9   : > { %s820_s30 = scalar_select %p156_p1, %s737_s23, %s158_s28  }
   0xa   : > { %p822_p5 = por %p169_p2, %p168_p0  ;;  %p826_p6 = por %p175_p4, %p174_p3 }
   0xb   : > { %p559_p7 = scmp.ge.s32.totalorder %s741_s24, 1  ;;  %p182_p8 = scmp.lt.s32.totalorder %s741_s24, 3 }
   0xc   : > { %s927_s8 = scalar_select %p826_p6, 1, 0 }
   0xd   : > { %p610_p9 = scmp.eq.s32.totalorder %s805_s25, 0  ;;  %p833_p10 = pnand %p559_p7, %p182_p8 }
   0xe   : > { %s743_s10 = smov [#allocation2]  }
   0xf   : > { %s195_s11 = sshll.u32 %s743_s10, 4  ;;  %p602_p11 = pneg %p833_p10  ;;  %s196_s11 = int_to_ptr.vmem [resolvable:$true] %s195_s11 }
  0x10   : > { %s662_s12 = scalar_lea.vmem %s196_s11, 128  ;;  %p670_p3 = scmp.lt.s32.totalorder %s196_s11, %s196_s11 }
  0x11   : > { %p603_p12 = pnand %p610_p9, %p602_p11  ;;  %p663_p0 = scmp.ne.s32.totalorder %s196_s11, %s662_s12 }
  0x12   : > { %p671_p4 = scmp.lt.s32.totalorder %s662_s12, %s662_s12 }
  0x13   : > { %p653_p13 = pneg %p603_p12 }
  0x14   : > { %p672_p6 = por %p671_p4, %p670_p3 }
  0x15   : > { %p665_p1 = pnand %p663_p0, %p653_p13 }
  0x17   : > { %p666_p2 = pneg %p665_p1 }
  0x19   : > { %p673_p7 = pnand %p672_p6, %p666_p2 }
  0x1b   : > { %676 = shalt.err (!%p673_p7)
}
  0x1c   : > { %605 = dma.hbm_to_vmem [thread:$0]  (!%p603_p12), %s920_s1, 128, %s196_s11, [#allocation3]  }
  0x1d   : > { %227 = sbr.rel (%p833_p10) target bundleno = 646 (0x286), region = 44 }
  0x22   : > { %720 = dma.done.wait (%p610_p9), [#allocation3], 128  }
  0x23   : > { %722 = vsyncadd (%p610_p9), [#allocation3], 4294967168  ;;  %p255_p8 = scmp.lt.s32.totalorder %s805_s25, 1  ;;  %v744_v0 = vmov 0.0   ;;  %vm745_vm0 = vmmov 0   ;;  %v746_v1 = vmov 0  }
  0x24   : > { %580 = vmatprep.subr.mxu0 %v744_v0  ;;  %582 = vmatprep.mubr.msk.f32.mxu0 %vm745_vm0, %v744_v0  ;;  %vm262_vm1 = vcmask 64512   ;;  %v260_v3 = vld [vmem:[#allocation2] sm:$0xff]  ;;  %vm350_vm3 = vcmask 1043456   ;;  %v747_v17 = vmov 1.0   ;;  %s253_s13 = sand.u32 1, %s733_s22  }
  0x25   : > { %s256_s15 = scalar_select %p255_p8, %s805_s25, 1  ;;  %650 = vset.pattern.permute.xlu0 %v746_v1  ;;  %585 = vmatprep.subr.bf16.mxu1 %v744_v0  ;;  %v336_v4 = vld [vmem:[%s921_s2] sm:$0xff] }
  0x26   : > { %587 = vmatprep.mubr.msk.bf16.mxu1 %vm745_vm0, %v744_v0  ;;  %339 = vperm.xlu0 %650, %v336_v4   ;;  %v394_v5 = vld [vmem:[%s923_s4] sm:$0xff]  ;;  %s254_s14 = scalar_lea.vmem [#allocation5], %s253_s13  ;;  %s479_s20 = scalar_lea.sflag [#allocation4], %s253_s13 }
  0x27   : > { %s564_s16 = sshll.u32 %s256_s15, 3  ;;  %v346_v12 = vld [vmem:[%s922_s3] sm:$0xf]  ;;  %s491_s15 = sshll.u32 %s254_s14, 4  ;;  %s875_s15 = int_to_ptr.vmem [resolvable:$true] %s491_s15 }
  0x28   : > { %s258_s19 = scalar_lea.vmem %s919_s0, %s564_s16  ;;  %v403_v15 = vld [vmem:[%s924_s5] sm:$0x1]  ;;  %s571_s16 = sshll.u32 %s805_s25, 4 }
  0x29   : > { %v261_v2 = vld [vmem:[%s258_s19] sm:$0xff]  ;;  %s880_s19 = scalar_lea.hbm %s925_s6, %s571_s16  ;;  %s677_s26 = scalar_lea.vmem %s875_s15, 16 }
  0x2a   : > { %581 = vmatpush3.msra.mxu0 %v261_v2  ;;  %397 = vperm.xlu0 %650, %v394_v5   ;;  %p678_p6 = scmp.ne.s32.totalorder %s875_s15, %s677_s26  ;;  %s748_s25 = smov [#allocation5]  }
  0x2b   : > { %583 = vmatmul.mubr.msk.f32.vlgmr.msra.gmra.mxu0 %vm262_vm1, %v260_v3  ;;  %591 = vmatprep.subr.mxu0 %v744_v0  ;;  %s681_s28 = sshll.u32 %s748_s25, 4  ;;  %s682_s28 = int_to_ptr.vmem [resolvable:$false] %s681_s28 }
  0x2c   : > { %593 = vmatprep.mubr.msk.f32.mxu0 %vm745_vm0, %v744_v0  ;;  %p679_p9 = pnand %p678_p6, %p822_p5  ;;  %s683_s29 = scalar_lea.vmem %s682_s28, 32 }
  0x2d   : > { %p684_p11 = scmp.lt.s32.totalorder %s875_s15, %s682_s28  ;;  %p685_p12 = scmp.lt.s32.totalorder %s683_s29, %s677_s26 }
  0x2e   : > { %p680_p10 = pneg %p679_p9 }
  0x2f   : > { %p686_p13 = por %p685_p12, %p684_p11 }
  0x31   : > { %p687_p0 = pnand %p686_p13, %p680_p10 }
  0xa1   : > { %v340_v6 = vpop.permute.xlu0 %339 }
  0xa5   : > { %v398_v13 = vpop.permute.xlu0 %397 }
  0xeb   : > { %v332_v7 = vpop.f32.mrf.mxu0 }
  0xec   : > { %vm342_vm2 = vcmp.gt.f32.partialorder %v332_v7, %v340_v6 }
  0xed   : > { %v566_v8 = vsel %vm342_vm2, 1.0, %v744_v0  ;;  %v584_v9 = vpop.f32.mrf.mxu0 }
  0xee   : > { %v345_v10 = vpack.c.bf16 %v566_v8, %v566_v8 }
  0xf0   : > { %v352_v11 = vsel %vm350_vm3, %v345_v10, 0 }
  0xf1   : > { %586 = vmatpush3.bf16.msra.mxu1 %v352_v11 }
  0xf4   : > { %588 = vmatmul.mubr.msk.bf16.vlgmr.msra.gmra.mxu1 %vm262_vm1, %v346_v12 }
 0x1b4   : > { %v388_v14 = vpop.f32.mrf.mxu1 }
 0x1b5   : > { %vm400_vm4 = vcmp.eq.f32.partialorder %v388_v14, %v398_v13 }
 0x1b6   : > { %v589_v16 = vpop.f32.mrf.mxu1  ;;  %592 = vmatpush3.msk.msra.mxu0 %vm400_vm4, %v747_v17 }
 0x1b7   : > { %594 = vmatmul.mubr.msk.f32.vlgmr.msra.gmra.mxu0 %vm262_vm1, %v403_v15 }
 0x1b8   : > { %v391_v18 = vpop.f32.mrf.mxu1 }
 0x1ba   : > { %v590_v19 = vpop.f32.mrf.mxu1 }
 0x277   : > { %v473_v20 = vpop.f32.mrf.mxu0 }
 0x278   : > { %477 = vst [vmem:[%s254_s14] sm:$0x1] %v473_v20 }
 0x279   : > { %v595_v21 = vpop.f32.mrf.mxu0 }
 0x27a   : > { %690 = shalt.err (!%p687_p0)
}
 0x27b   : > { %s691_s9 = scalar_lea.hbm %s880_s19, 16  ;;  %s695_s12 = scalar_lea.hbm %s925_s6, 32 }
 0x27c   : > { %p692_p1 = scmp.ne.s32.totalorder %s880_s19, %s691_s9  ;;  %p696_p4 = scmp.lt.s32.totalorder %s880_s19, %s925_s6 }
 0x27d   : > { %p697_p7 = scmp.lt.s32.totalorder %s695_s12, %s691_s9 }
 0x27e   : > { %p693_p2 = pnand %p692_p1, %p822_p5 }
 0x27f   : > { %p698_p8 = por %p697_p7, %p696_p4 }
 0x280   : > { %p694_p3 = pneg %p693_p2 }
 0x282   : > { %p699_p6 = pnand %p698_p8, %p694_p3 }
 0x284   : > { %702 = shalt.err (!%p699_p6)
}
 0x285   : > { %600 = dma.vmem_to_hbm [thread:$0]  (%p822_p5), %s875_s15, 16, %s880_s19, %s479_s20  }
 0x286 PF: > { %p612_p9 = scmp.ge.s32.totalorder %s741_s24, 2  ;;  %s503_s16 = sand.u32 1, %s729_s21  }
 0x287   : > { %p929_p10 = scmp.ne.s32.totalorder %s927_s8, 0  ;;  %s504_s17 = scalar_lea.sflag [#allocation4], %s503_s16 }
 0x289   : > { %p607_p11 = pnand %p612_p9, %p929_p10 }
 0x28b   : > { %p608_p12 = pneg %p607_p11 }
 0x28d   : > { %724 = dma.done.wait (%p608_p12), %s504_s17, 16  }
 0x28e   : > { %726 = vsyncadd (%p608_p12), %s504_s17, 4294967280  ;;  %p17_p13 = scmp.ge.s32.totalorder %s809_s27, 4   ;;  %s930_s21 = smov %s733_s22 }
 0x28f   : > { %s931_s22 = smov %s737_s23  ;;  %s932_s23 = smov %s820_s30 }
 0x290   : > { %s933_s24 = smov %s809_s27  ;;  %19 = sbr.rel (!%p17_p13) target bundleno = 4 (0x4), region = 84 }
 0x295   :  { %508 = vsyncpa [#allocation3], 1 }
 0x296   :  { %510 = vsyncpa [#allocation3 + $0x1], 1 }
 0x297   :  { %511 = vsyncpa [#allocation4], 1 }
 0x298   :  { %513 = vsyncpa [#allocation4 + $0x1], 1 }

</bundles_post_ra>
